<compile_context>
chip_gen: v6e
topology: v6e:2x2x1
jax: 0.10.0
libtpu: 0.0.40
codegen_flags: <defaults>
</compile_context>

<pallas_src>
import functools

import jax
import jax.numpy as jnp
from jax.experimental import pallas as pl
from jax.experimental.pallas import tpu as pltpu


def _tversky_sums_kernel(x_ref, t_ref, o_ref, *, hw, chunk, needs_mask):
    """Accumulates per-row [TP, sum(s), sum(t)] into o_ref of shape (rows, 3)."""
    k = pl.program_id(1)  # reduction axis over lane chunks

    @pl.when(k == 0)
    def _():
        o_ref[...] = jnp.zeros_like(o_ref)

    # Upcast to f32 in-kernel so bf16 / int8 inputs can be streamed from HBM
    # at reduced byte cost (and so v5e, which has no bf16 VPU/EUP, is happy).
    x = x_ref[...].astype(jnp.float32)   # (rows, chunk)
    t = t_ref[...].astype(jnp.float32)   # (rows, chunk)
    s = jax.nn.sigmoid(x)                # EUP

    rows = o_ref.shape[0]

    def accumulate(s_, t_):
        tp = jnp.sum(s_ * t_, axis=1, keepdims=True)   # (rows, 1)
        ss = jnp.sum(s_, axis=1, keepdims=True)        # (rows, 1)
        st = jnp.sum(t_, axis=1, keepdims=True)        # (rows, 1)
        # Single (rows, 3) RMW instead of three 1-lane-wide column updates.
        lane = jax.lax.broadcasted_iota(jnp.int32, (rows, 3), 1)
        upd = jnp.where(lane == 0, tp, jnp.where(lane == 1, ss, st))
        o_ref[...] += upd

    if needs_mask:
        # Only the last lane chunk overhangs HW; mask only there so the
        # steady-state blocks do no iota/compare/select work at all.
        is_last = k == pl.num_programs(1) - 1

        @pl.when(is_last)
        def _():
            col = jax.lax.broadcasted_iota(jnp.int32, s.shape, 1) + k * chunk
            valid = col < hw
            # select (not multiply) so OOB garbage (even NaN/Inf) cannot leak.
            accumulate(jnp.where(valid, s, 0.0), jnp.where(valid, t, 0.0))

        @pl.when(jnp.logical_not(is_last))
        def _():
            accumulate(s, t)
    else:
        accumulate(s, t)


def _sublane_multiple(dtype):
    # f32 -> 8, bf16 -> 16, int8 -> 32 sublanes per packed tile.
    return max(8, 32 // jnp.dtype(dtype).itemsize)


def _tversky_sums(x, t, *, chunk, row_block):
    """x, t: (R, HW). Returns (R, 3) f32 partials [TP, sum(s), sum(t)] per row."""
    R, HW = x.shape

    # Lane (minor) tiling.
    if HW <= chunk:
        chunk_eff = HW                                  # full-dim block: always legal
    else:
        chunk_eff = max(128, (chunk // 128) * 128)      # lane-aligned chunk
    num_k = pl.cdiv(HW, chunk_eff)
    needs_mask = (HW % chunk_eff) != 0

    # Sublane (second-minor) tiling: multiple of the packed-dtype tile, so
    # bf16 / int8 inputs tile legally and nothing is padded to 16 rows.
    mult = max(_sublane_multiple(x.dtype), _sublane_multiple(t.dtype))
    rb = max(mult, ((row_block + mult - 1) // mult) * mult)
    if R <= rb:
        rb = R                                          # full-dim block: always legal
    num_r = pl.cdiv(R, rb)

    kernel = functools.partial(
        _tversky_sums_kernel, hw=HW, chunk=chunk_eff, needs_mask=needs_mask)

    elems = R * HW
    cost = pl.CostEstimate(
        flops=4 * elems,
        transcendentals=elems,
        bytes_accessed=(x.size * x.dtype.itemsize
                        + t.size * t.dtype.itemsize
                        + R * 3 * 4),
    )

    return pl.pallas_call(
        kernel,
        out_shape=jax.ShapeDtypeStruct((R, 3), jnp.float32),
        grid_spec=pltpu.PrefetchScalarGridSpec(
            num_scalar_prefetch=0,
            grid=(num_r, num_k),                       # reduction axis last
            in_specs=[
                pl.BlockSpec((rb, chunk_eff), lambda r, k: (r, k)),
                pl.BlockSpec((rb, chunk_eff), lambda r, k: (r, k)),
            ],
            # Output block index constant across k -> VMEM-resident accumulator,
            # written back to HBM once per row block.
            out_specs=pl.BlockSpec((rb, 3), lambda r, k: (r, 0)),
        ),
        compiler_params=pltpu.CompilerParams(
            dimension_semantics=("parallel", "arbitrary"),
            vmem_limit_bytes=48 * 1024 * 1024,
        ),
        cost_estimate=cost,
    )(x, t)


@functools.partial(jax.jit,
                   static_argnames=("num_classes", "chunk", "row_block"))
def tversky_loss(inputs, targets, weight, *, num_classes=11, alpha=0.5,
                 beta=0.5, smooth=1.0, chunk=65536, row_block=32):
    """Pallas TverskyLoss forward. inputs/targets: (N, C, H, W), C==num_classes.

    inputs may be f32 or bf16; targets may be f32, bf16 or int8 -- the kernel
    upcasts to f32 internally, so narrower dtypes just cut HBM traffic.
    """
    N, C, H, W = inputs.shape
    assert C == num_classes
    # Free (no copy / transpose) view of NCHW: per-(n, c) sums are
    # permutation-invariant over H/W; classes are regrouped below.
    x = inputs.reshape(N * C, H * W)
    t = targets.reshape(N * C, H * W)

    sums = _tversky_sums(x, t, chunk=chunk, row_block=row_block)   # (N*C, 3)
    tot = jnp.sum(sums.reshape(N, C, 3), axis=0)                   # (C, 3)
    TP = tot[:, 0]
    FP = tot[:, 1] - TP        # sum(s) - sum(s*t) == sum(s*(1-t))
    FN = tot[:, 2] - TP        # sum(t) - sum(s*t) == sum((1-s)*t)

    tversky = (TP + smooth) / (TP + alpha * FP + beta * FN + smooth)
    tversky = 1.0 - tversky
    return jnp.mean(tversky * weight.astype(jnp.float32))


def _reference_loss(inputs, targets, weight, num_classes=11, alpha=0.5,
                    beta=0.5, smooth=1.0):
    """Pure-JAX mirror of the PyTorch module (for correctness check)."""
    s = jax.nn.sigmoid(inputs.astype(jnp.float32))
    t = targets.astype(jnp.float32)
    x_cl = jnp.transpose(s, (1, 0, 2, 3)).reshape(num_classes, -1)
    t_cl = jnp.transpose(t, (1, 0, 2, 3)).reshape(num_classes, -1)
    TP = jnp.sum(x_cl * t_cl, axis=1)
    FP = jnp.sum(x_cl * (1.0 - t_cl), axis=1)
    FN = jnp.sum((1.0 - x_cl) * t_cl, axis=1)
    tversky = (TP + smooth) / (TP + alpha * FP + beta * FN + smooth)
    return jnp.mean((1.0 - tversky) * weight.astype(jnp.float32))


if __name__ == "__main__":
    num_classes = 11
    key = jax.random.PRNGKey(0)
    k_in, k_tgt = jax.random.split(key)
    weight = jnp.ones((num_classes,), dtype=jnp.float32)

    # Case 1: f32, small segmentation-like shape (single lane chunk, no mask).
    N, H, W = 2, 16, 16
    inputs = jax.random.normal(k_in, (N, num_classes, H, W), dtype=jnp.float32)
    targets = (jax.random.uniform(k_tgt, (N, num_classes, H, W)) > 0.5
               ).astype(jnp.float32)
    loss = tversky_loss(inputs, targets, weight, num_classes=num_classes)
    loss = jax.block_until_ready(loss)
    ref = _reference_loss(inputs, targets, weight, num_classes=num_classes)
    assert jnp.allclose(loss, ref, rtol=1e-5, atol=1e-5), (loss, ref)

    # Case 2: ragged lane tail (HW % chunk != 0) via a small chunk override ->
    # exercises the masked-last-block pl.when path.
    H2, W2 = 16, 13
    inputs2 = jax.random.normal(k_in, (N, num_classes, H2, W2),
                                dtype=jnp.float32)
    targets2 = (jax.random.uniform(k_tgt, (N, num_classes, H2, W2)) > 0.5
                ).astype(jnp.float32)
    loss2 = tversky_loss(inputs2, targets2, weight, num_classes=num_classes,
                         chunk=128)
    loss2 = jax.block_until_ready(loss2)
    ref2 = _reference_loss(inputs2, targets2, weight, num_classes=num_classes)
    assert jnp.allclose(loss2, ref2, rtol=1e-5, atol=1e-5), (loss2, ref2)

    # Case 3: bf16 activations + bf16 targets (halved HBM traffic); the kernel
    # upcasts to f32 internally, and the reference sees the same bf16 values.
    inputs3 = inputs.astype(jnp.bfloat16)
    targets3 = targets.astype(jnp.bfloat16)
    loss3 = tversky_loss(inputs3, targets3, weight, num_classes=num_classes)
    loss3 = jax.block_until_ready(loss3)
    ref3 = _reference_loss(inputs3, targets3, weight, num_classes=num_classes)
    assert jnp.allclose(loss3, ref3, rtol=1e-5, atol=1e-5), (loss3, ref3)

    print("KERNEL_OK")
</pallas_src>

<mosaic_0001>
module attributes {stable_mosaic.version = 11 : i64} {
  func.func @_tversky_sums_kernel(%arg0: i32, %arg1: i32, %arg2: memref<22x256xf32, #tpu.memory_space<vmem>>, %arg3: memref<22x256xf32, #tpu.memory_space<vmem>>, %arg4: memref<22x3xf32, #tpu.memory_space<vmem>>) attributes {dimension_semantics = [#tpu.dimension_semantics<parallel>, #tpu.dimension_semantics<arbitrary>], iteration_bounds = array<i64: 1, 1>, scalar_prefetch = 0 : i64, scratch_operands = 0 : i64, tpu.core_type = #tpu.core_type<tc>, window_params = [{transform_indices = @transform_0, window_bounds = array<i64: 22, 256>}, {transform_indices = @transform_1, window_bounds = array<i64: 22, 256>}, {transform_indices = @transform_2, window_bounds = array<i64: 22, 3>}]} {
    %c0_i32 = arith.constant 0 : i32
    %0 = arith.cmpi eq, %arg1, %c0_i32 : i32
    %1 = arith.extui %0 : i1 to i32
    %c0_i32_0 = arith.constant 0 : i32
    %2 = arith.cmpi ne, %1, %c0_i32_0 : i32
    scf.if %2 {
      %cst_12 = arith.constant 0.000000e+00 : f32
      %33 = vector.broadcast %cst_12 : f32 to vector<22x3xf32>
      %c0_13 = arith.constant 0 : index
      %c0_14 = arith.constant 0 : index
      %34 = vector.load %arg4[%c0_13, %c0_14] : memref<22x3xf32, #tpu.memory_space<vmem>>, vector<22x3xf32>
      tpu.vector_store %arg4[%c0_13, %c0_14], %33 {strides = array<i32>} : memref<22x3xf32, #tpu.memory_space<vmem>>, vector<22x3xf32>,
    } else {
    }
    %c0 = arith.constant 0 : index
    %c0_1 = arith.constant 0 : index
    %3 = vector.load %arg2[%c0, %c0_1] : memref<22x256xf32, #tpu.memory_space<vmem>>, vector<22x256xf32>
    %c0_2 = arith.constant 0 : index
    %c0_3 = arith.constant 0 : index
    %4 = vector.load %arg3[%c0_2, %c0_3] : memref<22x256xf32, #tpu.memory_space<vmem>>, vector<22x256xf32>
    %5 = arith.negf %3 : vector<22x256xf32>
    %6 = math.exp %5 : vector<22x256xf32>
    %cst = arith.constant 1.000000e+00 : f32
    %7 = vector.broadcast %cst : f32 to vector<22x256xf32>
    %8 = arith.addf %7, %6 : vector<22x256xf32>
    %9 = arith.divf %7, %8 : vector<22x256xf32>
    %10 = arith.mulf %9, %4 : vector<22x256xf32>
    %cst_4 = arith.constant dense<0.000000e+00> : vector<22xf32>
    %11 = vector.multi_reduction <add>, %10, %cst_4 [1] : vector<22x256xf32> to vector<22xf32>
    %12 = vector.shape_cast %11 : vector<22xf32> to vector<22x1xf32>
    %cst_5 = arith.constant dense<0.000000e+00> : vector<22xf32>
    %13 = vector.multi_reduction <add>, %9, %cst_5 [1] : vector<22x256xf32> to vector<22xf32>
    %14 = vector.shape_cast %13 : vector<22xf32> to vector<22x1xf32>
    %cst_6 = arith.constant dense<0.000000e+00> : vector<22xf32>
    %15 = vector.multi_reduction <add>, %4, %cst_6 [1] : vector<22x256xf32> to vector<22xf32>
    %16 = vector.shape_cast %15 : vector<22xf32> to vector<22x1xf32>
    %17 = tpu.iota {dimensions = array<i32: 1>} : vector<22x3xi32>
    %c0_i32_7 = arith.constant 0 : i32
    %18 = vector.broadcast %c0_i32_7 : i32 to vector<22x3xi32>
    %19 = arith.cmpi eq, %17, %18 : vector<22x3xi32>
    %c1_i32 = arith.constant 1 : i32
    %20 = vector.broadcast %c1_i32 : i32 to vector<22x3xi32>
    %21 = arith.cmpi eq, %17, %20 : vector<22x3xi32>
    %22 = vector.shape_cast %14 : vector<22x1xf32> to vector<22x1xf32>
    %23 = vector.broadcast %22 : vector<22x1xf32> to vector<22x3xf32>
    %24 = vector.shape_cast %16 : vector<22x1xf32> to vector<22x1xf32>
    %25 = vector.broadcast %24 : vector<22x1xf32> to vector<22x3xf32>
    %26 = arith.select %21, %23, %25 : vector<22x3xi1>, vector<22x3xf32>
    %27 = vector.shape_cast %12 : vector<22x1xf32> to vector<22x1xf32>
    %28 = vector.broadcast %27 : vector<22x1xf32> to vector<22x3xf32>
    %29 = arith.select %19, %28, %26 : vector<22x3xi1>, vector<22x3xf32>
    %c0_8 = arith.constant 0 : index
    %c0_9 = arith.constant 0 : index
    %30 = vector.load %arg4[%c0_8, %c0_9] : memref<22x3xf32, #tpu.memory_space<vmem>>, vector<22x3xf32>
    %31 = arith.addf %30, %29 : vector<22x3xf32>
    %c0_10 = arith.constant 0 : index
    %c0_11 = arith.constant 0 : index
    %32 = vector.load %arg4[%c0_10, %c0_11] : memref<22x3xf32, #tpu.memory_space<vmem>>, vector<22x3xf32>
    tpu.vector_store %arg4[%c0_10, %c0_11], %31 {strides = array<i32>} : memref<22x3xf32, #tpu.memory_space<vmem>>, vector<22x3xf32>,
    return
  }
  func.func @transform_0(%arg0: i32, %arg1: i32) -> (i32, i32) {
    %c0_i32 = arith.constant 0 : i32
    return %arg0, %arg1 : i32, i32
  }
  func.func @transform_1(%arg0: i32, %arg1: i32) -> (i32, i32) {
    %c0_i32 = arith.constant 0 : i32
    return %arg0, %arg1 : i32, i32
  }
  func.func @transform_2(%arg0: i32, %arg1: i32) -> (i32, i32) {
    %c0_i32 = arith.constant 0 : i32
    %c0_i32_0 = arith.constant 0 : i32
    return %arg0, %c0_i32 : i32, i32
  }
}

</mosaic_0001>

<bundles_post_ra>
// kernel: tversky_loss.1
= control target key start
LH: loop header
LB: loop body
LE: loop exit
PB: predicated region body
PF: predicated region fallthrough
CT: control target
= control target key end

     0   :  { %vm80_vm0 = vcmask 1045504   ;;  %vm15_vm1 = vcmask 23552   ;;  %v164_v57 = vmov 0.0   ;;  %vm18_vm2 = vcmask 21504   ;;  %s255_s1 = inlined_call_operand.vmem [shape: f32[22,256], index: 1, kind: input, shape index: {}]   ;;  %s256_s0 = inlined_call_operand.vmem [shape: f32[22,256], index: 0, kind: input, shape index: {}]   ;;  %s257_s2 = inlined_call_operand.vmem [shape: f32[22,3], index: 2, kind: output, shape index: {}]  }
   0x1   :  { %v26_v0 = vld [vmem:[%s255_s1] sm:$0xff]  ;;  %v27_v1 = vld [vmem:[%s255_s1 + $0x8] sm:$0xff]  ;;  %v28_v6 = vld [vmem:[%s255_s1 + $0x10] sm:$0xff]  ;;  %17 = vst.msk [vmem:[%s257_s2 + $0x8] sm:$0xff] %vm15_vm1, %v164_v57  ;;  %v108_v60 = vlaneseq }
   0x2   :  { %v20_v2 = vld [vmem:[%s256_s0] sm:$0xff]  ;;  %v97_v3 = vadd.f32 %v27_v1, %v26_v0  ;;  %v21_v4 = vld [vmem:[%s256_s0 + $0x8] sm:$0xff]  ;;  %v29_v7 = vld [vmem:[%s255_s1 + $0x18] sm:$0xff]  ;;  %16 = vst.msk [vmem:[%s257_s2] sm:$0xff] %vm15_vm1, %v164_v57 }
   0x3   :  { %v133_v5 = vmul.f32 -1.442695, %v20_v2  ;;  %v134_v8 = vmul.f32 -1.442695, %v21_v4  ;;  %v100_v9 = vadd.f32 %v29_v7, %v28_v6  ;;  %v22_v10 = vld [vmem:[%s256_s0 + $0x10] sm:$0xff]  ;;  %v23_v11 = vld [vmem:[%s256_s0 + $0x18] sm:$0xff] }
   0x4   :  { %v30_v12 = vld [vmem:[%s255_s1 + $0x20] sm:$0x3f]  ;;  %98 = vadd.xlane.f32.xlu1 %v97_v3  ;;  %v135_v13 = vmul.f32 -1.442695, %v22_v10  ;;  %v136_v14 = vmul.f32 -1.442695, %v23_v11 }
   0x5   :  { %140 = vpow2.f32 %v133_v5  ;;  %v31_v15 = vld [vmem:[%s255_s1 + $0x28] sm:$0x3f]  ;;  %101 = vadd.xlane.f32.xlu0 %v100_v9  ;;  %v103_v16 = vsel %vm80_vm0, %v30_v12, 0.0  ;;  %v24_v18 = vld [vmem:[%s256_s0 + $0x20] sm:$0x3f]  ;;  %v109_v63 = vand.u32 127, %v108_v60 }
   0x6   :  { %142 = vpow2.f32 %v134_v8  ;;  %v104_v17 = vsel %vm80_vm0, %v31_v15, 0.0  ;;  %v25_v19 = vld [vmem:[%s256_s0 + $0x28] sm:$0x3f]  ;;  %v137_v21 = vmul.f32 -1.442695, %v24_v18 }
   0x7   :  { %144 = vpow2.f32 %v135_v13  ;;  %v105_v20 = vadd.f32 %v104_v17, %v103_v16  ;;  %v138_v22 = vmul.f32 -1.442695, %v25_v19  ;;  %19 = vst.msk [vmem:[%s257_s2 + $0x10] sm:$0x3f] %vm18_vm2, %v164_v57  ;;  %vm111_vm3 = vcmp.eq.s32.totalorder %v109_v63, 1 }
   0x8   :  { %146 = vpow2.f32 %v136_v14  ;;  %vm110_vm4 = vcmp.eq.s32.totalorder %v109_v63, 0  ;;  %v119_v5 = vld [vmem:[%s257_s2 + $0x8] sm:$0xff] }
   0x9   :  { %106 = vadd.xlane.f32.xlu1 %v105_v20  ;;  %148 = vpow2.f32 %v137_v21  ;;  %v118_v3 = vld [vmem:[%s257_s2] sm:$0xff] }
   0xa   :  { %150 = vpow2.f32 %v138_v22 }
  0x12   :  { %v141_v23 = vpop.eup %140 }
  0x13   :  { %v143_v24 = vpop.eup %142  ;;  %v50_v25 = vadd.f32 1.0, %v141_v23 }
  0x14   :  { %v145_v26 = vpop.eup %144  ;;  %v51_v27 = vadd.f32 1.0, %v143_v24 }
  0x15   :  { %v147_v28 = vpop.eup %146  ;;  %152 = vrcp.f32 %v50_v25  ;;  %v52_v29 = vadd.f32 1.0, %v145_v26 }
  0x16   :  { %v149_v30 = vpop.eup %148  ;;  %154 = vrcp.f32 %v51_v27  ;;  %v53_v31 = vadd.f32 1.0, %v147_v28 }
  0x17   :  { %v151_v32 = vpop.eup %150  ;;  %156 = vrcp.f32 %v52_v29  ;;  %v54_v33 = vadd.f32 1.0, %v149_v30 }
  0x18   :  { %158 = vrcp.f32 %v53_v31  ;;  %v55_v34 = vadd.f32 1.0, %v151_v32 }
  0x19   :  { %160 = vrcp.f32 %v54_v33 }
  0x1a   :  { %162 = vrcp.f32 %v55_v34 }
  0x22   :  { %v153_v35 = vpop.eup %152 }
  0x23   :  { %v155_v36 = vpop.eup %154  ;;  %v68_v41 = vmul.f32 %v153_v35, %v26_v0 }
  0x24   :  { %v157_v37 = vpop.eup %156  ;;  %v86_v38 = vadd.f32 %v155_v36, %v153_v35  ;;  %v69_v42 = vmul.f32 %v155_v36, %v27_v1 }
  0x25   :  { %v159_v39 = vpop.eup %158  ;;  %v70_v45 = vmul.f32 %v157_v37, %v28_v6 }
  0x26   :  { %v161_v40 = vpop.eup %160  ;;  %87 = vadd.xlane.f32.xlu0 %v86_v38  ;;  %v89_v43 = vadd.f32 %v159_v39, %v157_v37  ;;  %v71_v46 = vmul.f32 %v159_v39, %v29_v7  ;;  %v74_v52 = vadd.f32 %v69_v42, %v68_v41 }
  0x27   :  { %v163_v44 = vpop.eup %162  ;;  %v92_v47 = vsel %vm80_vm0, %v161_v40, 0.0  ;;  %v72_v48 = vmul.f32 %v161_v40, %v30_v12  ;;  %v120_v12 = vld [vmem:[%s257_s2 + $0x10] sm:$0x3f] }
  0x28   :  { %v93_v49 = vsel %vm80_vm0, %v163_v44, 0.0  ;;  %v73_v50 = vmul.f32 %v163_v44, %v31_v15  ;;  %v77_v53 = vadd.f32 %v71_v46, %v70_v45 }
  0x29   :  { %v94_v51 = vadd.f32 %v93_v49, %v92_v47  ;;  %v81_v54 = vsel %vm80_vm0, %v72_v48, 0.0 }
  0x2a   :  { %90 = vadd.xlane.f32.xlu0 %v89_v43  ;;  %v82_v55 = vsel %vm80_vm0, %v73_v50, 0.0 }
  0x2b   :  { %95 = vadd.xlane.f32.xlu1 %v94_v51  ;;  %v83_v56 = vadd.f32 %v82_v55, %v81_v54 }
  0x2e   :  { %75 = vadd.xlane.f32.xlu0 %v74_v52 }
  0x2f   :  { %78 = vadd.xlane.f32.xlu1 %v77_v53 }
  0x32   :  { %84 = vadd.xlane.f32.xlu0 %v83_v56 }
  0x8d   :  { %v99_v58 = vpop.xlane.xlu1 %98 }
  0x8e   :  { %v102_v59 = vpop.xlane.xlu0 %101 }
  0x92   :  { %v107_v61 = vpop.xlane.xlu1 %106 }
  0xaf   :  { %v88_v62 = vpop.xlane.xlu0 %87 }
  0xb0   :  { %v112_v4 = vsel %vm111_vm3, %v88_v62, %v99_v58 }
  0xb3   :  { %v91_v0 = vpop.xlane.xlu0 %90 }
  0xb4   :  { %v96_v1 = vpop.xlane.xlu1 %95  ;;  %v113_v2 = vsel %vm111_vm3, %v91_v0, %v102_v59 }
  0xb5   :  { %v114_v13 = vsel %vm111_vm3, %v96_v1, %v107_v61 }
  0xb7   :  { %v76_v6 = vpop.xlane.xlu0 %75 }
  0xb8   :  { %v79_v7 = vpop.xlane.xlu1 %78  ;;  %v115_v8 = vsel %vm110_vm4, %v76_v6, %v112_v4 }
  0xb9   :  { %v116_v9 = vsel %vm110_vm4, %v79_v7, %v113_v2  ;;  %v121_v10 = vadd.f32 %v118_v3, %v115_v8 }
  0xba   :  { %v122_v11 = vadd.f32 %v119_v5, %v116_v9 }
  0xbb   :  { %125 = vst.msk [vmem:[%s257_s2] sm:$0xff] %vm15_vm1, %v121_v10  ;;  %v85_v14 = vpop.xlane.xlu0 %84 }
  0xbc   :  { %126 = vst.msk [vmem:[%s257_s2 + $0x8] sm:$0xff] %vm15_vm1, %v122_v11  ;;  %v117_v15 = vsel %vm110_vm4, %v85_v14, %v114_v13 }
  0xbd   :  { %v123_v16 = vadd.f32 %v120_v12, %v117_v15 }
  0xbf   :  { %128 = vst.msk [vmem:[%s257_s2 + $0x10] sm:$0x3f] %vm18_vm2, %v123_v16 }

</bundles_post_ra>
